<compile_context>
chip_gen: v7x
topology: tpu7x:2x2x1
jax: 0.10.0
libtpu: 0.0.40
codegen_flags: <defaults>
</compile_context>

<pallas_src>
import functools

import jax
import jax.numpy as jnp
from jax.experimental import pallas as pl
from jax.experimental.pallas import tpu as pltpu


_LANE = 128
_TILE_ROWS = 1024  # rows of 128 lanes per tile -> ~6 MiB double-buffered I/O


def _loss_tile_kernel(x_ref, t_ref, bce_ref, inter_ref, sig_ref, tgt_ref, *,
                      tiles_per_chunk, num_tiles, needs_mask, needs_skip,
                      valid_in_last):
    """One (batch, chunk, tile) step of the fused 5-channel dice+BCE reduction.

    x_ref:   (5, K, 128) logits tile
    t_ref:   (K, 128)    target tile (shared by the 5 channels)
    bce_ref / inter_ref / sig_ref: (5, 128) lane-wise partial sums
    tgt_ref: (1, 128)    lane-wise target partial sum
    Output blocks stay resident across the (arbitrary) tile axis -> accumulators.
    """
    chunk = pl.program_id(1)
    i = pl.program_id(2)
    tile = chunk * tiles_per_chunk + i  # global pixel-tile index

    @pl.when(i == 0)
    def _init():
        bce_ref[...] = jnp.zeros_like(bce_ref)
        inter_ref[...] = jnp.zeros_like(inter_ref)
        sig_ref[...] = jnp.zeros_like(sig_ref)
        tgt_ref[...] = jnp.zeros_like(tgt_ref)

    def _accumulate(masked):
        x = x_ref[...].astype(jnp.float32)   # (5, K, 128)
        t = t_ref[...].astype(jnp.float32)   # (K, 128)
        tb = t[None, :, :]

        # Shared transcendentals: one exp + one log + one approx reciprocal.
        e = jnp.exp(-jnp.abs(x))                       # exp(-|x|) in (0, 1]
        one_plus_e = 1.0 + e
        softplus = jnp.log(one_plus_e)                 # log(1 + exp(-|x|))
        inv = pl.reciprocal(one_plus_e, approx=True)   # 1 / (1 + exp(-|x|))
        sig = jnp.where(x >= 0, inv, e * inv)          # sigmoid(x)

        bce_el = jnp.maximum(x, 0.0) - x * tb + softplus
        inter_el = sig * tb

        if masked:
            # Last (ragged) tile only: drop OOB rows / lane padding.  Use
            # jnp.where (select), NOT arithmetic masking, so OOB NaN/Inf
            # garbage cannot reach the accumulators.
            k, lanes = t.shape
            row_id = jax.lax.broadcasted_iota(jnp.int32, (k, lanes), 0)
            lane_id = jax.lax.broadcasted_iota(jnp.int32, (k, lanes), 1)
            valid = (row_id * lanes + lane_id) < valid_in_last
            v3 = valid[None, :, :]
            bce_el = jnp.where(v3, bce_el, 0.0)
            inter_el = jnp.where(v3, inter_el, 0.0)
            sig = jnp.where(v3, sig, 0.0)
            t = jnp.where(valid, t, 0.0)

        # Lane-wise partial reductions (sublane/K axis only; the 128-wide
        # cross-lane sum happens once in the wrapper epilogue).
        # TODO(synk): offload these K-axis sums to the idle MXU via a
        # ones-vector dot_general once the vmatmul lowering is verified.
        bce_ref[...] += jnp.sum(bce_el, axis=1)               # (5, 128)
        inter_ref[...] += jnp.sum(inter_el, axis=1)           # (5, 128)
        sig_ref[...] += jnp.sum(sig, axis=1)                  # (5, 128)
        tgt_ref[...] += jnp.sum(t, axis=0, keepdims=True)     # (1, 128)

    if needs_mask:
        @pl.when(tile == num_tiles - 1)
        def _last():
            _accumulate(True)

        @pl.when(tile < num_tiles - 1)
        def _body():
            _accumulate(False)
    elif needs_skip:
        @pl.when(tile < num_tiles)
        def _body():
            _accumulate(False)
    else:
        _accumulate(False)


def compute_loss(outputs, targets, eps=1e-5):
    """outputs: (B, 5, H, W) float logits, targets: (B, H, W) in [0, 1]."""
    B, C, H, W = outputs.shape
    assert C == 5, "ComputeLoss expects 5 output channels"
    n = H * W

    rows = -(-n // _LANE)               # 128-lane rows per batch element
    lane_pad = rows * _LANE - n

    # Free (row-major) reshapes; dtype conversion happens inside the kernel.
    x = outputs.reshape(B, C, n)
    t = targets.reshape(B, n)
    if lane_pad:
        # Uncommon path (H*W not 128-aligned): pad only to the next lane
        # multiple; tile raggedness is handled in-kernel.
        x = jnp.pad(x, ((0, 0), (0, 0), (0, lane_pad)))
        t = jnp.pad(t, ((0, 0), (0, lane_pad)))
    x = x.reshape(B, C, rows, _LANE)
    t = t.reshape(B, rows, _LANE)

    # Fixed tile size; last block may be ragged (masked in-kernel).
    k = rows if rows <= _TILE_ROWS else _TILE_ROWS
    num_tiles = -(-rows // k)
    covered = num_tiles * k * _LANE      # pixels spanned by all tiles
    needs_mask = covered != n
    valid_in_last = n - (num_tiles - 1) * k * _LANE

    # Megacore-friendly split of the tile axis into P parallel chunks, each
    # with its own accumulator slot (summed in the epilogue).
    P = 2 if num_tiles >= 2 else 1
    tiles_per_chunk = -(-num_tiles // P)
    needs_skip = P * tiles_per_chunk != num_tiles

    kernel = functools.partial(
        _loss_tile_kernel,
        tiles_per_chunk=tiles_per_chunk, num_tiles=num_tiles,
        needs_mask=needs_mask, needs_skip=needs_skip,
        valid_in_last=valid_in_last)

    def tile_idx(p, i):
        return jnp.minimum(p * tiles_per_chunk + i, num_tiles - 1)

    part_shape = jax.ShapeDtypeStruct((B, P, C, _LANE), jnp.float32)
    tgt_shape = jax.ShapeDtypeStruct((B, P, 1, _LANE), jnp.float32)

    bce_p, inter_p, sig_p, tgt_p = pl.pallas_call(
        kernel,
        out_shape=(part_shape, part_shape, part_shape, tgt_shape),
        grid=(B, P, tiles_per_chunk),
        in_specs=[
            pl.BlockSpec((None, C, k, _LANE),
                         lambda b, p, i: (b, 0, tile_idx(p, i), 0)),
            pl.BlockSpec((None, k, _LANE),
                         lambda b, p, i: (b, tile_idx(p, i), 0)),
        ],
        out_specs=(
            pl.BlockSpec((None, None, C, _LANE), lambda b, p, i: (b, p, 0, 0)),
            pl.BlockSpec((None, None, C, _LANE), lambda b, p, i: (b, p, 0, 0)),
            pl.BlockSpec((None, None, C, _LANE), lambda b, p, i: (b, p, 0, 0)),
            pl.BlockSpec((None, None, 1, _LANE), lambda b, p, i: (b, p, 0, 0)),
        ),
        compiler_params=pltpu.CompilerParams(
            dimension_semantics=("parallel", "parallel", "arbitrary"),
        ),
    )(x, t)

    # Tiny epilogue in plain JAX: cross-lane / cross-chunk / cross-batch sums
    # plus the per-channel dice math.
    bce_sum = jnp.sum(bce_p, axis=(0, 1, 3))     # (5,)
    inter = jnp.sum(inter_p, axis=(0, 1, 3))     # (5,)
    sig_sum = jnp.sum(sig_p, axis=(0, 1, 3))     # (5,)
    tgt_sum = jnp.sum(tgt_p)                     # scalar (shared by channels)

    bce = bce_sum / float(B * n)                              # per-channel mean BCE
    dice = (2.0 * inter + eps) / (sig_sum + tgt_sum + eps)    # per-channel dice
    return jnp.sum(bce + 1.0 - dice)


def _reference_loss(outputs, targets, eps=1e-5):
    """Plain-JAX reference mirroring the PyTorch module semantics."""
    targets = targets.astype(jnp.float32)
    total = 0.0
    for c in range(outputs.shape[1]):
        x = outputs[:, c, :, :].astype(jnp.float32)
        bce = jnp.mean(jnp.maximum(x, 0.0) - x * targets
                       + jnp.log1p(jnp.exp(-jnp.abs(x))))
        s = jax.nn.sigmoid(x)
        dice = (2.0 * jnp.sum(s * targets) + eps) / (jnp.sum(s) + jnp.sum(targets) + eps)
        total = total + bce + 1.0 - dice
    return total


if __name__ == "__main__":
    key = jax.random.PRNGKey(0)
    k1, k2 = jax.random.split(key)

    B, C, H, W = 2, 5, 16, 16
    outputs = jax.random.normal(k1, (B, C, H, W), dtype=jnp.float32)
    targets = (jax.random.uniform(k2, (B, H, W)) > 0.5).astype(jnp.float32)

    loss_fn = jax.jit(compute_loss)
    loss = jax.block_until_ready(loss_fn(outputs, targets))

    ref = _reference_loss(outputs, targets)
    # approx reciprocal in the sigmoid => slightly relaxed tolerance
    assert jnp.allclose(loss, ref, rtol=1e-2, atol=1e-2), (loss, ref)

    print("KERNEL_OK")
</pallas_src>

<mosaic_0001>
module attributes {stable_mosaic.version = 11 : i64} {
  func.func @_loss_tile_kernel(%arg0: i32, %arg1: i32, %arg2: i32, %arg3: memref<1x5x2x128xf32, #tpu.memory_space<vmem>>, %arg4: memref<1x2x128xf32, #tpu.memory_space<vmem>>, %arg5: memref<1x1x5x128xf32, #tpu.memory_space<vmem>>, %arg6: memref<1x1x5x128xf32, #tpu.memory_space<vmem>>, %arg7: memref<1x1x5x128xf32, #tpu.memory_space<vmem>>, %arg8: memref<1x1x1x128xf32, #tpu.memory_space<vmem>>) attributes {dimension_semantics = [#tpu.dimension_semantics<parallel>, #tpu.dimension_semantics<parallel>, #tpu.dimension_semantics<arbitrary>], iteration_bounds = array<i64: 2, 1, 1>, scalar_prefetch = 0 : i64, scratch_operands = 0 : i64, tpu.core_type = #tpu.core_type<tc>, window_params = [{transform_indices = @transform_0, window_bounds = array<i64: 1, 5, 2, 128>}, {transform_indices = @transform_1, window_bounds = array<i64: 1, 2, 128>}, {transform_indices = @transform_2, window_bounds = array<i64: 1, 1, 5, 128>}, {transform_indices = @transform_3, window_bounds = array<i64: 1, 1, 5, 128>}, {transform_indices = @transform_4, window_bounds = array<i64: 1, 1, 5, 128>}, {transform_indices = @transform_5, window_bounds = array<i64: 1, 1, 1, 128>}]} {
    %c0_i32 = arith.constant 0 : i32
    %0 = arith.cmpi eq, %arg2, %c0_i32 : i32
    %1 = arith.extui %0 : i1 to i32
    %c0_i32_0 = arith.constant 0 : i32
    %2 = arith.cmpi ne, %1, %c0_i32_0 : i32
    scf.if %2 {
      %cst_46 = arith.constant 0.000000e+00 : f32
      %57 = vector.broadcast %cst_46 : f32 to vector<5x128xf32>
      %c0_47 = arith.constant 0 : index
      %c0_48 = arith.constant 0 : index
      %c0_49 = arith.constant 0 : index
      %c0_50 = arith.constant 0 : index
      %58 = vector.load %arg5[%c0_47, %c0_48, %c0_49, %c0_50] : memref<1x1x5x128xf32, #tpu.memory_space<vmem>>, vector<1x1x5x128xf32>
      %59 = vector.shape_cast %58 : vector<1x1x5x128xf32> to vector<5x128xf32>
      %60 = vector.shape_cast %57 : vector<5x128xf32> to vector<1x1x5x128xf32>
      tpu.vector_store %arg5[%c0_47, %c0_48, %c0_49, %c0_50], %60 {strides = array<i32>} : memref<1x1x5x128xf32, #tpu.memory_space<vmem>>, vector<1x1x5x128xf32>,
      %cst_51 = arith.constant 0.000000e+00 : f32
      %61 = vector.broadcast %cst_51 : f32 to vector<5x128xf32>
      %c0_52 = arith.constant 0 : index
      %c0_53 = arith.constant 0 : index
      %c0_54 = arith.constant 0 : index
      %c0_55 = arith.constant 0 : index
      %62 = vector.load %arg6[%c0_52, %c0_53, %c0_54, %c0_55] : memref<1x1x5x128xf32, #tpu.memory_space<vmem>>, vector<1x1x5x128xf32>
      %63 = vector.shape_cast %62 : vector<1x1x5x128xf32> to vector<5x128xf32>
      %64 = vector.shape_cast %61 : vector<5x128xf32> to vector<1x1x5x128xf32>
      tpu.vector_store %arg6[%c0_52, %c0_53, %c0_54, %c0_55], %64 {strides = array<i32>} : memref<1x1x5x128xf32, #tpu.memory_space<vmem>>, vector<1x1x5x128xf32>,
      %cst_56 = arith.constant 0.000000e+00 : f32
      %65 = vector.broadcast %cst_56 : f32 to vector<5x128xf32>
      %c0_57 = arith.constant 0 : index
      %c0_58 = arith.constant 0 : index
      %c0_59 = arith.constant 0 : index
      %c0_60 = arith.constant 0 : index
      %66 = vector.load %arg7[%c0_57, %c0_58, %c0_59, %c0_60] : memref<1x1x5x128xf32, #tpu.memory_space<vmem>>, vector<1x1x5x128xf32>
      %67 = vector.shape_cast %66 : vector<1x1x5x128xf32> to vector<5x128xf32>
      %68 = vector.shape_cast %65 : vector<5x128xf32> to vector<1x1x5x128xf32>
      tpu.vector_store %arg7[%c0_57, %c0_58, %c0_59, %c0_60], %68 {strides = array<i32>} : memref<1x1x5x128xf32, #tpu.memory_space<vmem>>, vector<1x1x5x128xf32>,
      %cst_61 = arith.constant 0.000000e+00 : f32
      %69 = vector.broadcast %cst_61 : f32 to vector<1x128xf32>
      %c0_62 = arith.constant 0 : index
      %c0_63 = arith.constant 0 : index
      %c0_64 = arith.constant 0 : index
      %c0_65 = arith.constant 0 : index
      %70 = vector.load %arg8[%c0_62, %c0_63, %c0_64, %c0_65] : memref<1x1x1x128xf32, #tpu.memory_space<vmem>>, vector<1x1x1x128xf32>
      %71 = vector.shape_cast %70 : vector<1x1x1x128xf32> to vector<1x128xf32>
      %72 = vector.shape_cast %69 : vector<1x128xf32> to vector<1x1x1x128xf32>
      tpu.vector_store %arg8[%c0_62, %c0_63, %c0_64, %c0_65], %72 {strides = array<i32>} : memref<1x1x1x128xf32, #tpu.memory_space<vmem>>, vector<1x1x1x128xf32>,
    } else {
    }
    %c0 = arith.constant 0 : index
    %c0_1 = arith.constant 0 : index
    %c0_2 = arith.constant 0 : index
    %c0_3 = arith.constant 0 : index
    %3 = vector.load %arg3[%c0, %c0_1, %c0_2, %c0_3] : memref<1x5x2x128xf32, #tpu.memory_space<vmem>>, vector<1x5x2x128xf32>
    %4 = vector.shape_cast %3 : vector<1x5x2x128xf32> to vector<5x2x128xf32>
    %c0_4 = arith.constant 0 : index
    %c0_5 = arith.constant 0 : index
    %c0_6 = arith.constant 0 : index
    %5 = vector.load %arg4[%c0_4, %c0_5, %c0_6] : memref<1x2x128xf32, #tpu.memory_space<vmem>>, vector<1x2x128xf32>
    %6 = vector.shape_cast %5 : vector<1x2x128xf32> to vector<2x128xf32>
    %7 = vector.shape_cast %6 : vector<2x128xf32> to vector<1x2x128xf32>
    %8 = math.absf %4 : vector<5x2x128xf32>
    %cst = arith.constant 0.000000e+00 : f32
    %9 = vector.broadcast %cst : f32 to vector<5x2x128xf32>
    %10 = arith.subf %9, %8 : vector<5x2x128xf32>
    %11 = math.exp %10 : vector<5x2x128xf32>
    %cst_7 = arith.constant 1.000000e+00 : f32
    %12 = vector.broadcast %cst_7 : f32 to vector<5x2x128xf32>
    %13 = arith.addf %12, %11 : vector<5x2x128xf32>
    %14 = math.log %13 : vector<5x2x128xf32>
    %15 = tpu.reciprocal %13 {approx = true} : vector<5x2x128xf32> -> vector<5x2x128xf32>
    %cst_8 = arith.constant 0.000000e+00 : f32
    %16 = vector.broadcast %cst_8 : f32 to vector<5x2x128xf32>
    %17 = arith.cmpf oge, %4, %16 : vector<5x2x128xf32>
    %18 = arith.mulf %11, %15 : vector<5x2x128xf32>
    %19 = arith.select %17, %15, %18 : vector<5x2x128xi1>, vector<5x2x128xf32>
    %cst_9 = arith.constant 0.000000e+00 : f32
    %20 = vector.broadcast %cst_9 : f32 to vector<5x2x128xf32>
    %21 = arith.maximumf %4, %20 : vector<5x2x128xf32>
    %22 = vector.broadcast %7 : vector<1x2x128xf32> to vector<5x2x128xf32>
    %23 = arith.mulf %4, %22 : vector<5x2x128xf32>
    %24 = arith.subf %21, %23 : vector<5x2x128xf32>
    %25 = arith.addf %24, %14 : vector<5x2x128xf32>
    %26 = vector.broadcast %7 : vector<1x2x128xf32> to vector<5x2x128xf32>
    %27 = arith.mulf %19, %26 : vector<5x2x128xf32>
    %c0_10 = arith.constant 0 : index
    %c0_11 = arith.constant 0 : index
    %c0_12 = arith.constant 0 : index
    %c0_13 = arith.constant 0 : index
    %28 = vector.load %arg5[%c0_10, %c0_11, %c0_12, %c0_13] : memref<1x1x5x128xf32, #tpu.memory_space<vmem>>, vector<1x1x5x128xf32>
    %29 = vector.shape_cast %28 : vector<1x1x5x128xf32> to vector<5x128xf32>
    %cst_14 = arith.constant dense<0.000000e+00> : vector<5x128xf32>
    %30 = vector.multi_reduction <add>, %25, %cst_14 [1] : vector<5x2x128xf32> to vector<5x128xf32>
    %31 = arith.addf %29, %30 : vector<5x128xf32>
    %c0_15 = arith.constant 0 : index
    %c0_16 = arith.constant 0 : index
    %c0_17 = arith.constant 0 : index
    %c0_18 = arith.constant 0 : index
    %32 = vector.load %arg5[%c0_15, %c0_16, %c0_17, %c0_18] : memref<1x1x5x128xf32, #tpu.memory_space<vmem>>, vector<1x1x5x128xf32>
    %33 = vector.shape_cast %32 : vector<1x1x5x128xf32> to vector<5x128xf32>
    %34 = vector.shape_cast %31 : vector<5x128xf32> to vector<1x1x5x128xf32>
    tpu.vector_store %arg5[%c0_15, %c0_16, %c0_17, %c0_18], %34 {strides = array<i32>} : memref<1x1x5x128xf32, #tpu.memory_space<vmem>>, vector<1x1x5x128xf32>,
    %c0_19 = arith.constant 0 : index
    %c0_20 = arith.constant 0 : index
    %c0_21 = arith.constant 0 : index
    %c0_22 = arith.constant 0 : index
    %35 = vector.load %arg6[%c0_19, %c0_20, %c0_21, %c0_22] : memref<1x1x5x128xf32, #tpu.memory_space<vmem>>, vector<1x1x5x128xf32>
    %36 = vector.shape_cast %35 : vector<1x1x5x128xf32> to vector<5x128xf32>
    %cst_23 = arith.constant dense<0.000000e+00> : vector<5x128xf32>
    %37 = vector.multi_reduction <add>, %27, %cst_23 [1] : vector<5x2x128xf32> to vector<5x128xf32>
    %38 = arith.addf %36, %37 : vector<5x128xf32>
    %c0_24 = arith.constant 0 : index
    %c0_25 = arith.constant 0 : index
    %c0_26 = arith.constant 0 : index
    %c0_27 = arith.constant 0 : index
    %39 = vector.load %arg6[%c0_24, %c0_25, %c0_26, %c0_27] : memref<1x1x5x128xf32, #tpu.memory_space<vmem>>, vector<1x1x5x128xf32>
    %40 = vector.shape_cast %39 : vector<1x1x5x128xf32> to vector<5x128xf32>
    %41 = vector.shape_cast %38 : vector<5x128xf32> to vector<1x1x5x128xf32>
    tpu.vector_store %arg6[%c0_24, %c0_25, %c0_26, %c0_27], %41 {strides = array<i32>} : memref<1x1x5x128xf32, #tpu.memory_space<vmem>>, vector<1x1x5x128xf32>,
    %c0_28 = arith.constant 0 : index
    %c0_29 = arith.constant 0 : index
    %c0_30 = arith.constant 0 : index
    %c0_31 = arith.constant 0 : index
    %42 = vector.load %arg7[%c0_28, %c0_29, %c0_30, %c0_31] : memref<1x1x5x128xf32, #tpu.memory_space<vmem>>, vector<1x1x5x128xf32>
    %43 = vector.shape_cast %42 : vector<1x1x5x128xf32> to vector<5x128xf32>
    %cst_32 = arith.constant dense<0.000000e+00> : vector<5x128xf32>
    %44 = vector.multi_reduction <add>, %19, %cst_32 [1] : vector<5x2x128xf32> to vector<5x128xf32>
    %45 = arith.addf %43, %44 : vector<5x128xf32>
    %c0_33 = arith.constant 0 : index
    %c0_34 = arith.constant 0 : index
    %c0_35 = arith.constant 0 : index
    %c0_36 = arith.constant 0 : index
    %46 = vector.load %arg7[%c0_33, %c0_34, %c0_35, %c0_36] : memref<1x1x5x128xf32, #tpu.memory_space<vmem>>, vector<1x1x5x128xf32>
    %47 = vector.shape_cast %46 : vector<1x1x5x128xf32> to vector<5x128xf32>
    %48 = vector.shape_cast %45 : vector<5x128xf32> to vector<1x1x5x128xf32>
    tpu.vector_store %arg7[%c0_33, %c0_34, %c0_35, %c0_36], %48 {strides = array<i32>} : memref<1x1x5x128xf32, #tpu.memory_space<vmem>>, vector<1x1x5x128xf32>,
    %c0_37 = arith.constant 0 : index
    %c0_38 = arith.constant 0 : index
    %c0_39 = arith.constant 0 : index
    %c0_40 = arith.constant 0 : index
    %49 = vector.load %arg8[%c0_37, %c0_38, %c0_39, %c0_40] : memref<1x1x1x128xf32, #tpu.memory_space<vmem>>, vector<1x1x1x128xf32>
    %50 = vector.shape_cast %49 : vector<1x1x1x128xf32> to vector<1x128xf32>
    %cst_41 = arith.constant dense<0.000000e+00> : vector<128xf32>
    %51 = vector.multi_reduction <add>, %6, %cst_41 [0] : vector<2x128xf32> to vector<128xf32>
    %52 = vector.shape_cast %51 : vector<128xf32> to vector<1x128xf32>
    %53 = arith.addf %50, %52 : vector<1x128xf32>
    %c0_42 = arith.constant 0 : index
    %c0_43 = arith.constant 0 : index
    %c0_44 = arith.constant 0 : index
    %c0_45 = arith.constant 0 : index
    %54 = vector.load %arg8[%c0_42, %c0_43, %c0_44, %c0_45] : memref<1x1x1x128xf32, #tpu.memory_space<vmem>>, vector<1x1x1x128xf32>
    %55 = vector.shape_cast %54 : vector<1x1x1x128xf32> to vector<1x128xf32>
    %56 = vector.shape_cast %53 : vector<1x128xf32> to vector<1x1x1x128xf32>
    tpu.vector_store %arg8[%c0_42, %c0_43, %c0_44, %c0_45], %56 {strides = array<i32>} : memref<1x1x1x128xf32, #tpu.memory_space<vmem>>, vector<1x1x1x128xf32>,
    return
  }
  func.func @transform_0(%arg0: i32, %arg1: i32, %arg2: i32) -> (i32, i32, i32, i32) {
    %c1_i32 = arith.constant 1 : i32
    %0 = arith.muli %arg1, %c1_i32 : i32
    %1 = arith.addi %0, %arg2 : i32
    %c0_i32 = arith.constant 0 : i32
    %2 = arith.minsi %1, %c0_i32 : i32
    %c0_i32_0 = arith.constant 0 : i32
    %c0_i32_1 = arith.constant 0 : i32
    %c0_i32_2 = arith.constant 0 : i32
    return %arg0, %c0_i32_0, %2, %c0_i32_1 : i32, i32, i32, i32
  }
  func.func @transform_1(%arg0: i32, %arg1: i32, %arg2: i32) -> (i32, i32, i32) {
    %c1_i32 = arith.constant 1 : i32
    %0 = arith.muli %arg1, %c1_i32 : i32
    %1 = arith.addi %0, %arg2 : i32
    %c0_i32 = arith.constant 0 : i32
    %2 = arith.minsi %1, %c0_i32 : i32
    %c0_i32_0 = arith.constant 0 : i32
    %c0_i32_1 = arith.constant 0 : i32
    return %arg0, %2, %c0_i32_0 : i32, i32, i32
  }
  func.func @transform_2(%arg0: i32, %arg1: i32, %arg2: i32) -> (i32, i32, i32, i32) {
    %c0_i32 = arith.constant 0 : i32
    %c0_i32_0 = arith.constant 0 : i32
    %c0_i32_1 = arith.constant 0 : i32
    return %arg0, %arg1, %c0_i32, %c0_i32_0 : i32, i32, i32, i32
  }
  func.func @transform_3(%arg0: i32, %arg1: i32, %arg2: i32) -> (i32, i32, i32, i32) {
    %c0_i32 = arith.constant 0 : i32
    %c0_i32_0 = arith.constant 0 : i32
    %c0_i32_1 = arith.constant 0 : i32
    return %arg0, %arg1, %c0_i32, %c0_i32_0 : i32, i32, i32, i32
  }
  func.func @transform_4(%arg0: i32, %arg1: i32, %arg2: i32) -> (i32, i32, i32, i32) {
    %c0_i32 = arith.constant 0 : i32
    %c0_i32_0 = arith.constant 0 : i32
    %c0_i32_1 = arith.constant 0 : i32
    return %arg0, %arg1, %c0_i32, %c0_i32_0 : i32, i32, i32, i32
  }
  func.func @transform_5(%arg0: i32, %arg1: i32, %arg2: i32) -> (i32, i32, i32, i32) {
    %c0_i32 = arith.constant 0 : i32
    %c0_i32_0 = arith.constant 0 : i32
    %c0_i32_1 = arith.constant 0 : i32
    return %arg0, %arg1, %c0_i32, %c0_i32_0 : i32, i32, i32, i32
  }
}

</mosaic_0001>

<bundles_post_ra>
// kernel: compute_loss.1
= control target key start
LH: loop header
LB: loop body
LE: loop exit
PB: predicated region body
PF: predicated region fallthrough
CT: control target
= control target key end

     0   :  { %s972_s18 = smov 0   ;;  %s974_s19 = smov 0   ;;  %s1152_s0 = inlined_call_operand.vmem [shape: f32[2,5,2,128], index: 0, kind: input, shape index: {}]   ;;  %s1153_s1 = inlined_call_operand.vmem [shape: f32[2,2,128], index: 1, kind: input, shape index: {}]   ;;  %s1154_s2 = inlined_call_operand.vmem [shape: f32[2,1,5,128], index: 2, kind: output, shape index: {0}]   ;;  %s1155_s3 = inlined_call_operand.vmem [shape: f32[2,1,5,128], index: 3, kind: output, shape index: {1}]   ;;  %s1156_s4 = inlined_call_operand.vmem [shape: f32[2,1,5,128], index: 4, kind: output, shape index: {2}]   ;;  %s1157_s5 = inlined_call_operand.vmem [shape: f32[2,1,1,128], index: 5, kind: output, shape index: {3}]  }
   0x1   :  { %s976_s20 = smov 0  }
   0x2 LB: > { %s35_s21 = sadd.s32 1, %s935_s19  ;;  %p853_p0 = scmp.ge.s32.totalorder %s939_s20, 1  ;;  %s939_s20 = sphi %s976_s20, %s16_s20   ;;  %s935_s19 = sphi %s974_s19, %s1159_s19   ;;  %s931_s18 = sphi %s972_s18, %s1158_s18  }
   0x3   : > { %p37_p1 = scmp.ge.s32.totalorder %s35_s21, 2  ;;  %p264_p2 = scmp.lt.s32.totalorder %s939_s20, 3 }
   0x5   : > { %s1161_s21 = smov (%p37_p1, %s35_s21), 0  ;;  %p265_p3 = pnand %p853_p0, %p264_p2 }
   0x6   : > { %p333_p4 = scmp.lt.s32.totalorder (!%p265_p3), %s931_s18, 1  ;;  %v941_v0 = vmov (!%p265_p3), 0.0   ;;  %vm479_vm0 = vcmask (!%p265_p3), 1041408   ;;  %vm520_vm6 = vcmask (!%p265_p3), 1041409   ;;  %vm522_vm7 = vcmask (!%p265_p3), 1042434  }
   0x7   : > { %268 = sbr.rel (%p265_p3) target bundleno = 98 (0x62), region = 28  ;;  %vm524_vm8 = vcmask (!%p265_p3), 1043459   ;;  %vm526_vm9 = vcmask (!%p265_p3), 1044484  }
   0xe   : > { %s1163_s18 = smov (!%p333_p4, %s931_s18), 1 }
   0xf   : > { %s861_s22 = smul.u32 10, %s1163_s18  ;;  %s856_s23 = sshll.u32 %s1163_s18, 3 }
  0x10   : > { %s1000_s29 = scalar_lea.vmem %s1154_s2, %s856_s23  ;;  %s1012_s7 = scalar_lea.vmem %s1155_s3, %s856_s23 }
  0x11   : > { %s340_s26 = scalar_lea.vmem %s1152_s0, %s861_s22  ;;  %388 = vst [vmem:[%s1000_s29] sm:$0x1f] %v941_v0  ;;  %s1017_s10 = scalar_lea.vmem %s1156_s4, %s856_s23  ;;  %389 = vst [vmem:[%s1012_s7] sm:$0x1f] %v941_v0 }
  0x12   : > { %v1003_v1 = vld [vmem:[%s340_s26] sm:$0x3]  ;;  %v1005_v2 = vld [vmem:[%s340_s26 + $0x2] sm:$0x3]  ;;  %v1007_v3 = vld [vmem:[%s340_s26 + $0x4] sm:$0x3]  ;;  %s1029_s13 = scalar_lea.vmem %s1157_s5, %s1163_s18 }
  0x13   : > { %v1019_v4 = vld [vmem:[%s340_s26 + $0x6] sm:$0x3]  ;;  %v398_v5 = vand.u32 2147483647, %v1003_v1  ;;  %v399_v6 = vand.u32 2147483647, %v1005_v2 }
  0x14   : > { %390 = vst [vmem:[%s1017_s10] sm:$0x1f] %v941_v0  ;;  %v400_v7 = vand.u32 2147483647, %v1007_v3  ;;  %v401_v8 = vand.u32 2147483647, %v1019_v4  ;;  %391 = vst [vmem:[%s1029_s13] sm:$0x1] %v941_v0 }
  0x15   : > { %v1034_v9 = vld [vmem:[%s340_s26 + $0x8] sm:$0x3]  ;;  %s855_s14 = sshll.u32 %s1163_s18, 1  ;;  %v403_v10 = vsub.f32 0.0, %v398_v5  ;;  %v404_v11 = vsub.f32 0.0, %v399_v6  ;;  %v453_v41 = vmax.f32 %v1003_v1, 0.0 }
  0x16   : > { %v402_v12 = vand.u32 2147483647, %v1034_v9  ;;  %v405_v13 = vsub.f32 0.0, %v400_v7  ;;  %v406_v14 = vsub.f32 0.0, %v401_v8  ;;  %s353_s17 = scalar_lea.vmem %s1153_s1, %s855_s14  ;;  %v454_v43 = vmax.f32 %v1005_v2, 0.0 }
  0x17   : > { %v408_v15 = vmul.f32 1.442695, %v403_v10  ;;  %v410_v16 = vmul.f32 1.442695, %v404_v11  ;;  %v1041_v21 = vld [vmem:[%s353_s17] sm:$0x3] }
  0x18   : > { %v407_v17 = vsub.f32 0.0, %v402_v12  ;;  %v412_v18 = vmul.f32 1.442695, %v405_v13  ;;  %v414_v19 = vmul.f32 1.442695, %v406_v14  ;;  %v628_v22 = vsel %vm479_vm0, %v1041_v21, 0.0 }
  0x19   : > { %887 = vpow2.f32 %v408_v15  ;;  %v629_v23 = vrot.slane %v628_v22, 4  ;;  %v458_v42 = vmul.f32 %v1041_v21, %v1003_v1  ;;  %v459_v44 = vmul.f32 %v1041_v21, %v1005_v2 }
  0x1a   : > { %v416_v20 = vmul.f32 1.442695, %v407_v17  ;;  %889 = vpow2.f32 %v410_v16  ;;  %v455_v45 = vmax.f32 %v1007_v3, 0.0  ;;  %v460_v46 = vmul.f32 %v1041_v21, %v1007_v3 }
  0x1b   : > { %891 = vpow2.f32 %v412_v18  ;;  %v630_v24 = vadd.f32 %v629_v23, %v628_v22  ;;  %v627_v35 = vld [vmem:[%s1029_s13] sm:$0x1]  ;;  %v461_v47 = vmul.f32 %v1041_v21, %v1019_v4  ;;  %v456_v48 = vmax.f32 %v1019_v4, 0.0 }
  0x1c   : > { %893 = vpow2.f32 %v414_v19  ;;  %v457_v49 = vmax.f32 %v1034_v9, 0.0  ;;  %v462_v50 = vmul.f32 %v1041_v21, %v1034_v9  ;;  %v463_v51 = vsub.f32 %v453_v41, %v458_v42 }
  0x1d   : > { %895 = vpow2.f32 %v416_v20  ;;  %v631_v25 = vrot.slane %v630_v24, 2  ;;  %v464_v53 = vsub.f32 %v454_v43, %v459_v44  ;;  %v465_v56 = vsub.f32 %v455_v45, %v460_v46 }
  0x1e   : > { %v466_v59 = vsub.f32 %v456_v48, %v461_v47  ;;  %v467_v60 = vsub.f32 %v457_v49, %v462_v50  ;;  %vm438_vm1 = vcmp.ge.f32.partialorder %v1003_v1, 0.0  ;;  %vm439_vm2 = vcmp.ge.f32.partialorder %v1005_v2, 0.0 }
  0x1f   : > { %v632_v27 = vadd.f32 %v631_v25, %v630_v24  ;;  %vm440_vm3 = vcmp.ge.f32.partialorder %v1007_v3, 0.0  ;;  %vm441_vm4 = vcmp.ge.f32.partialorder %v1019_v4, 0.0  ;;  %vm442_vm5 = vcmp.ge.f32.partialorder %v1034_v9, 0.0 }
  0x21   : > { %v633_v32 = vrot.slane %v632_v27, 1 }
  0x23   : > { %v1045_v26 = vpop.eup %887  ;;  %v634_v38 = vadd.f32 %v633_v32, %v632_v27 }
  0x24   : > { %v1047_v28 = vpop.eup %889  ;;  %v418_v29 = vadd.f32 1.0, %v1045_v26 }
  0x25   : > { %v1050_v30 = vpop.eup %891  ;;  %v419_v31 = vadd.f32 1.0, %v1047_v28  ;;  %v635_v40 = vadd.f32 %v634_v38, %v627_v35 }
  0x26   : > { %v1053_v33 = vpop.eup %893  ;;  %v420_v34 = vadd.f32 1.0, %v1050_v30  ;;  %897 = vlog2.f32 %v418_v29 }
  0x27   : > { %v1057_v36 = vpop.eup %895  ;;  %v421_v37 = vadd.f32 1.0, %v1053_v33  ;;  %899 = vlog2.f32 %v419_v31  ;;  %636 = vst [vmem:[%s1029_s13] sm:$0x1] %v635_v40 }
  0x28   : > { %v422_v39 = vadd.f32 1.0, %v1057_v36  ;;  %901 = vlog2.f32 %v420_v34 }
  0x29   : > { %903 = vlog2.f32 %v421_v37 }
  0x2a   : > { %905 = vlog2.f32 %v422_v39 }
  0x2b   : > { %907 = vrcp.f32 %v418_v29 }
  0x2c   : > { %909 = vrcp.f32 %v419_v31 }
  0x2d   : > { %911 = vrcp.f32 %v420_v34 }
  0x2e   : > { %913 = vrcp.f32 %v421_v37 }
  0x2f   : > { %915 = vrcp.f32 %v422_v39 }
  0x30   : > { %v898_v52 = vpop.eup %897 }
  0x31   : > { %v900_v54 = vpop.eup %899  ;;  %v424_v55 = vmul.f32 0.6931472, %v898_v52 }
  0x32   : > { %v902_v57 = vpop.eup %901  ;;  %v426_v58 = vmul.f32 0.6931472, %v900_v54 }
  0x33   : > { %v904_v61 = vpop.eup %903  ;;  %v428_v62 = vmul.f32 0.6931472, %v902_v57  ;;  %v468_v63 = vadd.f32 %v463_v51, %v424_v55 }
  0x34   : > { %v906_v0 = vpop.eup %905  ;;  %v430_v5 = vmul.f32 0.6931472, %v904_v61  ;;  %v469_v6 = vadd.f32 %v464_v53, %v426_v58 }
  0x35   : > { %v908_v7 = vpop.eup %907  ;;  %v432_v8 = vmul.f32 0.6931472, %v906_v0  ;;  %v470_v10 = vadd.f32 %v465_v56, %v428_v62  ;;  %v480_v11 = vsel %vm479_vm0, %v468_v63, 0.0 }
  0x36   : > { %v910_v12 = vpop.eup %909  ;;  %v471_v13 = vadd.f32 %v466_v59, %v430_v5  ;;  %v481_v14 = vrot.slane %v480_v11, 4  ;;  %v487_v15 = vsel %vm479_vm0, %v469_v6, 0.0  ;;  %v443_v16 = vmul.f32 %v908_v7, %v1045_v26 }
  0x37   : > { %v912_v17 = vpop.eup %911  ;;  %v472_v18 = vadd.f32 %v467_v60, %v432_v8  ;;  %v488_v19 = vrot.slane %v487_v15, 4  ;;  %v494_v20 = vsel %vm479_vm0, %v470_v10, 0.0  ;;  %v444_v22 = vmul.f32 %v910_v12, %v1047_v28  ;;  %v478_v8 = vld [vmem:[%s1000_s29] sm:$0x1f] }
  0x38   : > { %v914_v23 = vpop.eup %913  ;;  %v482_v24 = vadd.f32 %v481_v14, %v480_v11  ;;  %v495_v25 = vrot.slane %v494_v20, 4  ;;  %v501_v27 = vsel %vm479_vm0, %v471_v13, 0.0  ;;  %v445_v29 = vmul.f32 %v912_v17, %v1050_v30 }
  0x39   : > { %v916_v31 = vpop.eup %915  ;;  %v489_v32 = vadd.f32 %v488_v19, %v487_v15  ;;  %v502_v34 = vrot.slane %v501_v27, 4  ;;  %v508_v26 = vsel %vm479_vm0, %v472_v18, 0.0  ;;  %v446_v35 = vmul.f32 %v914_v23, %v1053_v33 }
  0x3a   : > { %v483_v37 = vrot.slane %v482_v24, 2  ;;  %v496_v38 = vadd.f32 %v495_v25, %v494_v20  ;;  %v509_v39 = vrot.slane %v508_v26, 4  ;;  %v447_v28 = vmul.f32 %v916_v31, %v1057_v36 }
  0x3b   : > { %v490_v40 = vrot.slane %v489_v32, 2  ;;  %v503_v41 = vadd.f32 %v502_v34, %v501_v27  ;;  %v448_v30 = vsel %vm438_vm1, %v908_v7, %v443_v16  ;;  %v449_v42 = vsel %vm439_vm2, %v910_v12, %v444_v22 }
  0x3c   : > { %v484_v43 = vadd.f32 %v483_v37, %v482_v24  ;;  %v497_v44 = vrot.slane %v496_v38, 2  ;;  %v510_v45 = vadd.f32 %v509_v39, %v508_v26  ;;  %v450_v33 = vsel %vm440_vm3, %v912_v17, %v445_v29 }
  0x3d   : > { %v491_v46 = vadd.f32 %v490_v40, %v489_v32  ;;  %v504_v47 = vrot.slane %v503_v41, 2  ;;  %v1100_v36 = vsel %vm441_vm4, %v914_v23, %v446_v35  ;;  %v1104_v48 = vsel %vm442_vm5, %v916_v31, %v447_v28 }
  0x3e   : > { %v485_v1 = vrot.slane %v484_v43, 1  ;;  %v498_v49 = vadd.f32 %v497_v44, %v496_v38  ;;  %v511_v2 = vrot.slane %v510_v45, 2  ;;  %v473_v50 = vmul.f32 %v448_v30, %v1041_v21 }
  0x3f   : > { %v492_v51 = vrot.slane %v491_v46, 1  ;;  %v505_v52 = vadd.f32 %v504_v47, %v503_v41  ;;  %v474_v3 = vmul.f32 %v449_v42, %v1041_v21  ;;  %v475_v53 = vmul.f32 %v450_v33, %v1041_v21 }
  0x40   : > { %v486_v54 = vadd.f32 %v485_v1, %v484_v43  ;;  %v499_v4 = vrot.slane %v498_v49, 1  ;;  %v512_v55 = vadd.f32 %v511_v2, %v510_v45  ;;  %v476_v9 = vmul.f32 %v1100_v36, %v1041_v21 }
  0x41   : > { %v493_v56 = vadd.f32 %v492_v51, %v491_v46  ;;  %v506_v57 = vrot.slane %v505_v52, 1  ;;  %v477_v58 = vmul.f32 %v1104_v48, %v1041_v21  ;;  %v532_v59 = vsel %vm479_vm0, %v473_v50, 0.0 }
  0x42   : > { %v500_v60 = vadd.f32 %v499_v4, %v498_v49  ;;  %v513_v61 = vrot.slane %v512_v55, 1  ;;  %v533_v62 = vrot.slane %v532_v59, 4  ;;  %v539_v63 = vsel %vm479_vm0, %v474_v3, 0.0 }
  0x43   : > { %v507_v0 = vadd.f32 %v506_v57, %v505_v52  ;;  %v521_v5 = vsel %vm520_vm6, %v493_v56, %v486_v54  ;;  %v540_v6 = vrot.slane %v539_v63, 4  ;;  %v546_v7 = vsel %vm479_vm0, %v475_v53, 0.0 }
  0x44   : > { %v514_v10 = vadd.f32 %v513_v61, %v512_v55  ;;  %v523_v11 = vsel %vm522_vm7, %v500_v60, %v521_v5  ;;  %v534_v12 = vadd.f32 %v533_v62, %v532_v59  ;;  %v547_v13 = vrot.slane %v546_v7, 4  ;;  %v531_v59 = vld [vmem:[%s1012_s7] sm:$0x1f] }
  0x45   : > { %v525_v21 = vsel %vm524_vm8, %v507_v0, %v523_v11  ;;  %v541_v14 = vadd.f32 %v540_v6, %v539_v63  ;;  %v553_v15 = vsel %vm479_vm0, %v476_v9, 0.0  ;;  %v560_v16 = vsel %vm479_vm0, %v477_v58, 0.0 }
  0x46   : > { %v527_v17 = vsel %vm526_vm9, %v514_v10, %v525_v21  ;;  %v535_v18 = vrot.slane %v534_v12, 2  ;;  %v548_v19 = vadd.f32 %v547_v13, %v546_v7  ;;  %v554_v20 = vrot.slane %v553_v15, 4 }
  0x47   : > { %v529_v22 = vadd.f32 %v527_v17, %v478_v8  ;;  %v542_v23 = vrot.slane %v541_v14, 2  ;;  %v561_v24 = vrot.slane %v560_v16, 4  ;;  %v580_v25 = vsel %vm479_vm0, %v448_v30, 0.0 }
  0x48   : > { %v536_v27 = vadd.f32 %v535_v18, %v534_v12  ;;  %v549_v29 = vrot.slane %v548_v19, 2  ;;  %v555_v31 = vadd.f32 %v554_v20, %v553_v15  ;;  %v581_v32 = vrot.slane %v580_v25, 4 }
  0x49   : > { %530 = vst [vmem:[%s1000_s29] sm:$0x1f] %v529_v22  ;;  %v543_v34 = vadd.f32 %v542_v23, %v541_v14  ;;  %v562_v26 = vadd.f32 %v561_v24, %v560_v16  ;;  %v587_v35 = vsel %vm479_vm0, %v449_v42, 0.0  ;;  %v594_v37 = vsel %vm479_vm0, %v450_v33, 0.0  ;;  %v579_v23 = vld [vmem:[%s1017_s10] sm:$0x1f] }
  0x4a   : > { %v537_v38 = vrot.slane %v536_v27, 1  ;;  %v550_v39 = vadd.f32 %v549_v29, %v548_v19  ;;  %v556_v28 = vrot.slane %v555_v31, 2  ;;  %v582_v40 = vadd.f32 %v581_v32, %v580_v25 }
  0x4b   : > { %v544_v41 = vrot.slane %v543_v34, 1  ;;  %v563_v43 = vrot.slane %v562_v26, 2  ;;  %v588_v44 = vrot.slane %v587_v35, 4  ;;  %v595_v45 = vrot.slane %v594_v37, 4 }
  0x4c   : > { %v538_v30 = vadd.f32 %v537_v38, %v536_v27  ;;  %v551_v46 = vrot.slane %v550_v39, 1  ;;  %v557_v47 = vadd.f32 %v556_v28, %v555_v31  ;;  %v583_v1 = vrot.slane %v582_v40, 2 }
  0x4d   : > { %v545_v49 = vadd.f32 %v544_v41, %v543_v34  ;;  %v564_v2 = vadd.f32 %v563_v43, %v562_v26  ;;  %v589_v50 = vadd.f32 %v588_v44, %v587_v35  ;;  %v596_v51 = vadd.f32 %v595_v45, %v594_v37 }
  0x4e   : > { %v552_v42 = vadd.f32 %v551_v46, %v550_v39  ;;  %v558_v52 = vrot.slane %v557_v47, 1  ;;  %v584_v33 = vadd.f32 %v583_v1, %v582_v40  ;;  %v601_v3 = vsel %vm479_vm0, %v1100_v36, 0.0 }
  0x4f   : > { %v565_v53 = vrot.slane %v564_v2, 1  ;;  %v572_v54 = vsel %vm520_vm6, %v545_v49, %v538_v30  ;;  %v590_v4 = vrot.slane %v589_v50, 2  ;;  %v597_v55 = vrot.slane %v596_v51, 2 }
  0x50   : > { %v559_v9 = vadd.f32 %v558_v52, %v557_v47  ;;  %v573_v56 = vsel %vm522_vm7, %v552_v42, %v572_v54  ;;  %v585_v57 = vrot.slane %v584_v33, 1  ;;  %v602_v58 = vrot.slane %v601_v3, 4 }
  0x51   : > { %v566_v60 = vadd.f32 %v565_v53, %v564_v2  ;;  %v591_v61 = vadd.f32 %v590_v4, %v589_v50  ;;  %v598_v62 = vadd.f32 %v597_v55, %v596_v51  ;;  %v608_v63 = vsel %vm479_vm0, %v1104_v48, 0.0 }
  0x52   : > { %v574_v36 = vsel %vm524_vm8, %v559_v9, %v573_v56  ;;  %v603_v0 = vadd.f32 %v602_v58, %v601_v3  ;;  %v609_v5 = vrot.slane %v608_v63, 4  ;;  %v586_v7 = vadd.f32 %v585_v57, %v584_v33 }
  0x53   : > { %v575_v6 = vsel %vm526_vm9, %v566_v60, %v574_v36  ;;  %v592_v8 = vrot.slane %v591_v61, 1  ;;  %v599_v10 = vrot.slane %v598_v62, 1 }
  0x54   : > { %v577_v11 = vadd.f32 %v575_v6, %v531_v59  ;;  %v604_v12 = vrot.slane %v603_v0, 2  ;;  %v610_v13 = vadd.f32 %v609_v5, %v608_v63 }
  0x55   : > { %v593_v21 = vadd.f32 %v592_v8, %v591_v61  ;;  %v600_v14 = vadd.f32 %v599_v10, %v598_v62 }
  0x56   : > { %578 = vst [vmem:[%s1012_s7] sm:$0x1f] %v577_v11  ;;  %v605_v15 = vadd.f32 %v604_v12, %v603_v0  ;;  %v611_v16 = vrot.slane %v610_v13, 2 }
  0x57   : > { %v620_v48 = vsel %vm520_vm6, %v593_v21, %v586_v7 }
  0x58   : > { %v606_v17 = vrot.slane %v605_v15, 1  ;;  %v612_v18 = vadd.f32 %v611_v16, %v610_v13  ;;  %v621_v19 = vsel %vm522_vm7, %v600_v14, %v620_v48 }
  0x5a   : > { %v607_v20 = vadd.f32 %v606_v17, %v605_v15  ;;  %v613_v22 = vrot.slane %v612_v18, 1 }
  0x5c   : > { %v614_v24 = vadd.f32 %v613_v22, %v612_v18  ;;  %v622_v25 = vsel %vm524_vm8, %v607_v20, %v621_v19 }
  0x5e   : > { %v623_v27 = vsel %vm526_vm9, %v614_v24, %v622_v25 }
  0x5f   : > { %v625_v29 = vadd.f32 %v623_v27, %v579_v23 }
  0x61   : > { %626 = vst [vmem:[%s1017_s10] sm:$0x1f] %v625_v29 }
  0x62 PF: > { %s16_s20 = sadd.s32 1, %s939_s20   ;;  %s1158_s18 = smov %s935_s19 }
  0x63   : > { %p13_p5 = scmp.ge.s32.totalorder %s16_s20, 4   ;;  %s1159_s19 = smov %s1161_s21 }
  0x65   :  { %15 = sbr.rel (!%p13_p5) target bundleno = 2 (0x2), region = 101 }

</bundles_post_ra>
